<compile_context>
chip_gen: v7x
topology: tpu7x:2x2x1
jax: 0.10.0
libtpu: 0.0.40
codegen_flags: <defaults>
</compile_context>

<pallas_src>
import math

import jax
import jax.numpy as jnp
from jax.experimental import pallas as pl
from jax.experimental.pallas import tpu as pltpu


def _copy_kernel(x_ref, o_ref):
    # Full-tile elementwise identity (VMEM pass-through).
    o_ref[...] = x_ref[...]


_LANE_CANDIDATES = (4096, 2048, 1024, 512, 256, 128)


def _sublane_multiple(dtype) -> int:
    """Sublane multiple: 8 for 32-bit, 16 for 16-bit, 32 for 8-bit dtypes."""
    itemsize = jnp.dtype(dtype).itemsize
    return max(8, 32 // max(1, itemsize))


def _pick_lane(total: int, sub: int) -> int:
    """Pick a lane width (multiple of 128).

    Prefer one that tiles `total` exactly into (k*sub, lane); otherwise the
    widest lane that still leaves at least one full (sub, lane) tile.  Returns
    0 if the whole array is smaller than a single (sub, 128) tile.
    """
    for lane in _LANE_CANDIDATES:
        if total % lane == 0 and (total // lane) % sub == 0:
            return lane
    for lane in _LANE_CANDIDATES:
        if total >= sub * lane:
            return lane
    return 0


def _block_budget_bytes() -> int:
    """~4 MiB per block buffer, scaled down if physical VMEM is small.

    BlockSpec double-buffers both the input and output tile (4 buffers), so a
    4 MiB budget uses ~16 MiB of scoped VMEM — inside the explicit 32 MiB
    limit below on every generation (v5e/v6e 128 MiB physical, v7x 64 MiB).
    """
    try:
        vmem = pltpu.get_tpu_info().vmem_capacity_bytes
    except Exception:  # pragma: no cover - conservative fallback off-TPU
        vmem = 64 << 20
    return max(1 << 20, min(4 << 20, vmem // 16))


def _copy_single_block(flat: jax.Array) -> jax.Array:
    """Whole-array single-block copy (only used for tiny arrays / tails)."""
    n = flat.shape[0]
    x2d = flat.reshape(1, n)
    out2d = pl.pallas_call(
        _copy_kernel,
        out_shape=jax.ShapeDtypeStruct((1, n), flat.dtype),
        # No grid / specs: the full (tiny) array is one block, which is exempt
        # from the (8, 128) tiling constraint.
    )(x2d)
    return out2d.reshape(n)


def _copy_tiled(x2d: jax.Array, sub: int) -> jax.Array:
    """Tiled lane-dense streaming copy over a (rows, lane) slab."""
    rows, lane = x2d.shape
    itemsize = jnp.dtype(x2d.dtype).itemsize

    budget_rows = _block_budget_bytes() // (lane * itemsize)
    budget_rows = max(sub, (budget_rows // sub) * sub)
    tr = min(rows, budget_rows)
    # Give multi-TensorCore parts (v7x) several independent tiles when there
    # is enough data; no-op for small inputs and harmless on v5e/v6e.
    if rows >= 4 * sub:
        tr = min(tr, max(sub, ((rows // 4) // sub) * sub))

    grid = (pl.cdiv(rows, tr),)
    nbytes = rows * lane * itemsize

    return pl.pallas_call(
        _copy_kernel,
        out_shape=jax.ShapeDtypeStruct((rows, lane), x2d.dtype),
        grid=grid,
        in_specs=[pl.BlockSpec((tr, lane), lambda i: (i, 0))],
        out_specs=pl.BlockSpec((tr, lane), lambda i: (i, 0)),
        compiler_params=pltpu.CompilerParams(
            # Independent row tiles: lets v7x shard the copy across both
            # TensorCores; harmless on single-core v5e/v6e.
            dimension_semantics=("parallel",),
            # Explicit limit so 4 x 4 MiB block buffers never trip v5e's
            # 16 MiB default scoped VMEM; 32 MiB fits all generations.
            vmem_limit_bytes=32 << 20,
        ),
        cost_estimate=pl.CostEstimate(
            flops=0, transcendentals=0, bytes_accessed=2 * nbytes
        ),
    )(x2d)


def resnet_forward(x: jax.Array) -> jax.Array:
    """Pallas implementation of ResNet.forward (identity over the NCHW input)."""
    orig_shape = x.shape
    orig_dtype = x.dtype
    total = int(math.prod(orig_shape)) if orig_shape else 1
    if total == 0:
        return x

    sub = _sublane_multiple(orig_dtype)
    lane = _pick_lane(total, sub)
    flat = x.reshape(-1)

    if lane == 0:
        # Whole array smaller than one (sub, 128) tile: trivially tiny copy.
        return _copy_single_block(flat).reshape(orig_shape)

    rows = ((total // lane) // sub) * sub
    main = rows * lane
    tail = total - main  # < sub * lane elements (<= ~128 KiB)

    if tail == 0:
        out = _copy_tiled(flat.reshape(rows, lane), sub)
        return out.reshape(orig_shape)

    # Ragged total: main slab through the tiled path, tiny tail separately.
    main_out = _copy_tiled(flat[:main].reshape(rows, lane), sub)
    tail_out = _copy_single_block(flat[main:])
    return jnp.concatenate([main_out.reshape(-1), tail_out]).reshape(orig_shape)


if __name__ == "__main__":
    key = jax.random.PRNGKey(0)
    # Small NCHW input consistent with a DeepLab-v2 ResNet image input.
    x = jax.random.normal(key, (2, 4, 16, 16), dtype=jnp.float32)

    y = resnet_forward(x)
    y = jax.block_until_ready(y)

    assert y.shape == x.shape and y.dtype == x.dtype
    assert bool(jnp.all(y == x))
    print("KERNEL_OK")
</pallas_src>

<mosaic_0001>
module attributes {stable_mosaic.version = 11 : i64} {
  func.func @_copy_kernel(%arg0: i32, %arg1: memref<8x256xf32, #tpu.memory_space<vmem>>, %arg2: memref<8x256xf32, #tpu.memory_space<vmem>>) attributes {dimension_semantics = [#tpu.dimension_semantics<parallel>], iteration_bounds = array<i64: 1>, scalar_prefetch = 0 : i64, scratch_operands = 0 : i64, tpu.core_type = #tpu.core_type<tc>, window_params = [{transform_indices = @transform_0, window_bounds = array<i64: 8, 256>}, {transform_indices = @transform_1, window_bounds = array<i64: 8, 256>}]} {
    %c0 = arith.constant 0 : index
    %c0_0 = arith.constant 0 : index
    %0 = vector.load %arg1[%c0, %c0_0] : memref<8x256xf32, #tpu.memory_space<vmem>>, vector<8x256xf32>
    %c0_1 = arith.constant 0 : index
    %c0_2 = arith.constant 0 : index
    %1 = vector.load %arg2[%c0_1, %c0_2] : memref<8x256xf32, #tpu.memory_space<vmem>>, vector<8x256xf32>
    tpu.vector_store %arg2[%c0_1, %c0_2], %0 {strides = array<i32>} : memref<8x256xf32, #tpu.memory_space<vmem>>, vector<8x256xf32>,
    return
  }
  func.func @transform_0(%arg0: i32) -> (i32, i32) {
    %c0_i32 = arith.constant 0 : i32
    %c0_i32_0 = arith.constant 0 : i32
    return %arg0, %c0_i32 : i32, i32
  }
  func.func @transform_1(%arg0: i32) -> (i32, i32) {
    %c0_i32 = arith.constant 0 : i32
    %c0_i32_0 = arith.constant 0 : i32
    return %arg0, %c0_i32 : i32, i32
  }
}

</mosaic_0001>

<bundles_post_ra>
// kernel: tpu_custom_call.1
= control target key start
LH: loop header
LB: loop body
LE: loop exit
PB: predicated region body
PF: predicated region fallthrough
CT: control target
= control target key end

     0   :  { %6 = vsyncpa [#allocation3], 0  ;;  %s126_s0 = inlined_call_operand.hbm [shape: f32[8,256], index: 0, kind: input, shape index: {}]   ;;  %s127_s1 = inlined_call_operand.hbm [shape: f32[8,256], index: 1, kind: output, shape index: {}]  }
   0x1   :  { %7 = vsyncpa [#allocation4], 0  ;;  %s90_s6 = smov [#allocation2]   ;;  %s42_s10 = scalar_lea.hbm %s126_s0, 256 }
   0x2   :  { %s14_s7 = sshll.u32 %s90_s6, 4  ;;  %p43_p0 = scmp.ne.s32.totalorder %s126_s0, %s42_s10  ;;  %s15_s7 = int_to_ptr.vmem [resolvable:$true] %s14_s7 }
   0x3   :  { %p46_p1 = scmp.lt.u32.totalorder %s42_s10, %s126_s0 }
   0x5   :  { %p48_p2 = pnand %p46_p1, %p43_p0 }
   0x7   :  { %51 = shalt.err (!%p48_p2)
}
   0x8   :  { %s52_s15 = scalar_lea.vmem %s15_s7, 256  ;;  %p57_p4 = scmp.lt.s32.totalorder %s15_s7, %s15_s7 }
   0x9   :  { %p53_p3 = scmp.ne.s32.totalorder %s15_s7, %s52_s15  ;;  %p58_p5 = scmp.lt.s32.totalorder %s52_s15, %s52_s15 }
   0xb   :  { %p59_p6 = por %p58_p5, %p57_p4 }
   0xd   :  { %p60_p7 = pnand %p59_p6, %p53_p3 }
   0xf   :  { %63 = shalt.err (!%p60_p7)
}
  0x10   :  { %17 = dma.hbm_to_vmem [thread:$0]  %s126_s0, 256, %s15_s7, [#allocation3]  }
  0x11   :  { %86 = dma.done.wait [#allocation3], 256  }
  0x12   :  { %87 = vsyncadd [#allocation3], 4294967040  ;;  %s91_s18 = smov [#allocation5]   ;;  %v21_v0 = vld [vmem:[#allocation2] sm:$0xff]  ;;  %v22_v1 = vld [vmem:[#allocation2 + $0x8] sm:$0xff] }
  0x13   :  { %s31_s19 = sshll.u32 %s91_s18, 4  ;;  %23 = vst [vmem:[#allocation5] sm:$0xff] %v21_v0  ;;  %24 = vst [vmem:[#allocation5 + $0x8] sm:$0xff] %v22_v1  ;;  %s32_s19 = int_to_ptr.vmem [resolvable:$true] %s31_s19 }
  0x14   :  { %s64_s20 = scalar_lea.vmem %s32_s19, 256  ;;  %p69_p9 = scmp.lt.s32.totalorder %s32_s19, %s32_s19 }
  0x15   :  { %p65_p8 = scmp.ne.s32.totalorder %s32_s19, %s64_s20  ;;  %p70_p10 = scmp.lt.s32.totalorder %s64_s20, %s64_s20 }
  0x17   :  { %p71_p11 = por %p70_p10, %p69_p9 }
  0x19   :  { %p72_p12 = pnand %p71_p11, %p65_p8 }
  0x1b   :  { %75 = shalt.err (!%p72_p12)
}
  0x1c   :  { %s76_s0 = scalar_lea.hbm %s127_s1, 256 }
  0x1d   :  { %p77_p13 = scmp.ne.s32.totalorder %s127_s1, %s76_s0  ;;  %p80_p0 = scmp.lt.u32.totalorder %s76_s0, %s127_s1 }
  0x1f   :  { %p82_p1 = pnand %p80_p0, %p77_p13 }
  0x21   :  { %85 = shalt.err (!%p82_p1)
}
  0x22   :  { %34 = dma.vmem_to_hbm [thread:$0]  %s32_s19, 256, %s127_s1, [#allocation4]  }
  0x23   :  { %88 = dma.done.wait [#allocation4], 256  }
  0x24   :  { %89 = vsyncadd [#allocation4], 4294967040 }
  0x25   :  { %38 = vsyncpa [#allocation3], 1 }
  0x26   :  { %39 = vsyncpa [#allocation4], 1 }

</bundles_post_ra>
